<compile_context>
chip_gen: v7x
topology: tpu7x:2x2x1
jax: 0.10.0
libtpu: 0.0.40
codegen_flags: <defaults>
</compile_context>

<pallas_src>
import functools

import jax
import jax.numpy as jnp
from jax import lax
from jax.experimental import pallas as pl
from jax.experimental.pallas import tpu as pltpu

_NEG_BIG = -1e30  # finite "-inf" so masked lanes never create NaNs in the online LSE


def _ce_kernel(x_ref, t_ref, loss_ref, m_sc, l_sc, w_sc, *, eps, n_rows, n_cols):
    """One (row-tile, class-tile) grid step of label-smoothed cross entropy.

    x_ref    : [bn, bc]    logits tile (any float dtype; upcast to f32 in-kernel)
    t_ref    : [bn, 1]     int32 targets for this row tile
    loss_ref : [1, 1, bn]  f32 per-row loss (lane-dense), written on last class step
    m/l/w_sc : [bn, 1]     f32 scratch: running max, running sum-of-exp,
               running (eps/C)*sum_c x_c + (1-eps)*x_target accumulator
    """
    i = pl.program_id(0)            # row-tile index   ("parallel")
    j = pl.program_id(1)            # class-tile index ("arbitrary" / reduction)
    n_j = pl.num_programs(1)
    bn, bc = x_ref.shape

    @pl.when(j == 0)
    def _():
        m_sc[...] = jnp.full(m_sc.shape, _NEG_BIG, dtype=jnp.float32)
        l_sc[...] = jnp.zeros(l_sc.shape, dtype=jnp.float32)
        w_sc[...] = jnp.zeros(w_sc.shape, dtype=jnp.float32)

    x = x_ref[...].astype(jnp.float32)                    # [bn, bc]
    t_local = t_ref[...] - j * bc                         # [bn, 1] tile-local target col
    col = lax.broadcasted_iota(jnp.int32, (1, bc), 1)     # [1, bc] tiny iota

    def step(x_lse, x_sum):
        # x_lse: logits for max/exp (masked to _NEG_BIG on ragged lanes)
        # x_sum: logits for the row sums (masked to 0.0 on ragged lanes)
        # ---- online logsumexp over the class axis ----
        tile_max = jnp.max(x_lse, axis=-1, keepdims=True)
        m_new = jnp.maximum(m_sc[...], tile_max)
        alpha = jnp.exp(m_sc[...] - m_new)                # rescale old sum
        p = jnp.exp(x_lse - m_new)                        # masked lanes -> ~0
        l_sc[...] = alpha * l_sc[...] + jnp.sum(p, axis=-1, keepdims=True)
        m_sc[...] = m_new
        # ---- fused smoothing + target gather: two row sums, scalar weights ----
        onehot = col == t_local                           # [bn, bc] (target col is always valid)
        tgt_x = jnp.sum(jnp.where(onehot, x_sum, 0.0), axis=-1, keepdims=True)
        sum_x = jnp.sum(x_sum, axis=-1, keepdims=True)
        w_sc[...] += (eps / n_cols) * sum_x + (1.0 - eps) * tgt_x

    if n_cols % bc == 0:
        # No ragged class tile anywhere: pure fast path, no masking work at all.
        step(x, x)
    else:
        @pl.when(j < n_j - 1)
        def _():                                          # interior tiles: fast path
            step(x, x)

        @pl.when(j == n_j - 1)
        def _():                                          # last tile: mask ragged lanes
            valid = col < (n_cols - j * bc)               # [1, bc], broadcasts over rows
            step(jnp.where(valid, x, _NEG_BIG), jnp.where(valid, x, 0.0))

    # ---- finalize on the last class tile ----
    @pl.when(j == n_j - 1)
    def _():
        loss = (m_sc[...] + jnp.log(l_sc[...])) - w_sc[...]          # [bn, 1]
        if n_rows % bn != 0:
            # Ragged row tile: zero rows past N (their logits are HBM padding garbage).
            row = lax.broadcasted_iota(jnp.int32, (bn, 1), 0) + i * bn
            loss = jnp.where(row < n_rows, loss, 0.0)
        loss_ref[0, 0, :] = loss[:, 0]                    # lane-dense store


def _vmem_capacity_bytes():
    """Per-TensorCore VMEM capacity; conservative (v7x-sized) fallback."""
    try:
        return int(pltpu.get_tpu_info().vmem_capacity_bytes)
    except Exception:
        return 64 * 1024 * 1024


def cross_entropy_loss(logits, targets, epsilon, *, block_n=None, block_c=None):
    """Pallas TPU equivalent of nn.CrossEntropyLoss(label_smoothing=epsilon)(logits, targets).

    logits:  (N, C) float array.  bf16 logits are the intended fast path -- the
             kernel is a one-pass HBM stream, so halving logit bytes is ~2x on
             v5e/v6e; the kernel upcasts to f32 internally.
    targets: (N,) integer class indices in [0, C).
    Returns the scalar mean loss (float32).
    """
    N, C = logits.shape
    if targets.shape != (N,):
        raise ValueError(f"targets must have shape ({N},), got {targets.shape}")

    vmem_cap = _vmem_capacity_bytes()
    small_vmem = vmem_cap <= 96 * 1024 * 1024   # v7x-like: 64 MiB/TC, 3.2 TB/s HBM, 2 TCs

    if block_c is None:
        # v7x: >=4-8 MiB of logits per grid step so the ~0.35 us step overhead is
        # amortized at 3.2 TB/s; v5e/v6e are already ~85% of roofline at 2 MiB/step.
        block_c = 8192 if small_vmem else 2048
    if block_n is None:
        block_n = 256

    # Tile sizes: full dim if it fits, otherwise aligned to (8, 128).
    bc = C if C <= block_c else max(128, (block_c // 128) * 128)
    bn = N if N <= block_n else max(8, (block_n // 8) * 8)
    # v7x megacore: make sure the "parallel" batch axis has >= 2 row tiles.
    if small_vmem and N >= 16 and pl.cdiv(N, bn) < 2:
        bn = min(bn, (((N + 1) // 2 + 7) // 8) * 8)

    grid = (pl.cdiv(N, bn), pl.cdiv(C, bc))
    n_row_tiles = grid[0]

    t2 = targets.astype(jnp.int32).reshape(N, 1)

    # VMEM budget: double-buffered logits tile + headroom for the few live
    # (bn, bc) f32 elementwise temporaries (upcast / exp / select) + misc small
    # buffers.  Cap below the per-TC capacity so Mosaic keeps internal scratch.
    itemsize = jnp.dtype(logits.dtype).itemsize
    tile_bytes = bn * bc * itemsize
    need = 2 * tile_bytes + 3 * bn * bc * 4 + 2 * 1024 * 1024
    cap = 52 * 1024 * 1024 if small_vmem else 100 * 1024 * 1024
    vmem_limit = int(min(max(need, 4 * 1024 * 1024), cap))

    per_row = pl.pallas_call(
        functools.partial(_ce_kernel, eps=float(epsilon), n_rows=N, n_cols=C),
        out_shape=jax.ShapeDtypeStruct((n_row_tiles, 1, bn), jnp.float32),
        grid_spec=pltpu.PrefetchScalarGridSpec(
            num_scalar_prefetch=0,
            grid=grid,
            in_specs=[
                pl.BlockSpec((bn, bc), lambda i, j: (i, j)),   # logits tile (pipelined HBM stream)
                pl.BlockSpec((bn, 1), lambda i, j: (i, 0)),    # targets for this row tile
            ],
            out_specs=pl.BlockSpec((1, 1, bn), lambda i, j: (i, 0, 0)),  # lane-dense per-row loss
            scratch_shapes=[
                pltpu.VMEM((bn, 1), jnp.float32),   # running max
                pltpu.VMEM((bn, 1), jnp.float32),   # running sum of exp
                pltpu.VMEM((bn, 1), jnp.float32),   # running weighted-logit sum
            ],
        ),
        compiler_params=pltpu.CompilerParams(
            dimension_semantics=("parallel", "arbitrary"),
            vmem_limit_bytes=vmem_limit,
        ),
    )(logits, t2)

    # reduction='mean' over the true batch size (ragged rows were zeroed in-kernel).
    return jnp.sum(per_row) / N


def _reference(logits, targets, epsilon):
    # pure-JAX reference for sanity checking
    N, C = logits.shape
    logp = jax.nn.log_softmax(logits.astype(jnp.float32), axis=-1)
    q = (1.0 - epsilon) * jax.nn.one_hot(targets, C, dtype=jnp.float32) + epsilon / C
    return jnp.mean(-jnp.sum(q * logp, axis=-1))


if __name__ == "__main__":
    key = jax.random.PRNGKey(0)
    k1, k2 = jax.random.split(key)

    N, C = 20, 200        # small shapes, deliberately ragged vs. the tiles below
    epsilon = 0.1         # args.epsilon

    logits = jax.random.normal(k1, (N, C), dtype=jnp.float32)
    targets = jax.random.randint(k2, (N,), 0, C, dtype=jnp.int32)

    # Tiled path: grid = (3, 2) -> exercises online LSE, ragged row tiles and the
    # masked last-class-tile path plus the unmasked interior fast path.
    loss = cross_entropy_loss(logits, targets, epsilon, block_n=8, block_c=128)
    jax.block_until_ready(loss)
    ref = _reference(logits, targets, epsilon)
    assert jnp.allclose(loss, ref, atol=1e-5, rtol=1e-5), (loss, ref)

    # Default tiles + bf16 logits (the intended fast path; halves HBM bytes).
    # Single class tile -> the trace-time no-masking path.
    logits_bf16 = logits.astype(jnp.bfloat16)
    loss_bf16 = cross_entropy_loss(logits_bf16, targets, epsilon)
    jax.block_until_ready(loss_bf16)
    ref_bf16 = _reference(logits_bf16.astype(jnp.float32), targets, epsilon)
    assert jnp.allclose(loss_bf16, ref_bf16, atol=1e-4, rtol=1e-4), (loss_bf16, ref_bf16)

    print("KERNEL_OK")
</pallas_src>

<mosaic_0001>
module attributes {stable_mosaic.version = 11 : i64} {
  func.func @_ce_kernel(%arg0: i32, %arg1: i32, %arg2: memref<8x128xf32, #tpu.memory_space<vmem>>, %arg3: memref<8x1xi32, #tpu.memory_space<vmem>>, %arg4: memref<1x1x8xf32, #tpu.memory_space<vmem>>, %arg5: memref<8x1xf32, #tpu.memory_space<vmem>>, %arg6: memref<8x1xf32, #tpu.memory_space<vmem>>, %arg7: memref<8x1xf32, #tpu.memory_space<vmem>>) attributes {dimension_semantics = [#tpu.dimension_semantics<parallel>, #tpu.dimension_semantics<arbitrary>], iteration_bounds = array<i64: 3, 2>, scalar_prefetch = 0 : i64, scratch_operands = 3 : i64, tpu.core_type = #tpu.core_type<tc>, window_params = [{transform_indices = @transform_0, window_bounds = array<i64: 8, 128>}, {transform_indices = @transform_1, window_bounds = array<i64: 8, 1>}, {transform_indices = @transform_2, window_bounds = array<i64: 1, 1, 8>}]} {
    %c0_i32 = arith.constant 0 : i32
    %0 = arith.cmpi eq, %arg1, %c0_i32 : i32
    %1 = arith.extui %0 : i1 to i32
    %c0_i32_0 = arith.constant 0 : i32
    %2 = arith.cmpi ne, %1, %c0_i32_0 : i32
    scf.if %2 {
      %cst = arith.constant -1.000000e+30 : f32
      %18 = vector.broadcast %cst : f32 to vector<8x1xf32>
      %c0_9 = arith.constant 0 : index
      %c0_10 = arith.constant 0 : index
      %19 = vector.load %arg5[%c0_9, %c0_10] : memref<8x1xf32, #tpu.memory_space<vmem>>, vector<8x1xf32>
      tpu.vector_store %arg5[%c0_9, %c0_10], %18 {strides = array<i32>} : memref<8x1xf32, #tpu.memory_space<vmem>>, vector<8x1xf32>,
      %cst_11 = arith.constant 0.000000e+00 : f32
      %20 = vector.broadcast %cst_11 : f32 to vector<8x1xf32>
      %c0_12 = arith.constant 0 : index
      %c0_13 = arith.constant 0 : index
      %21 = vector.load %arg6[%c0_12, %c0_13] : memref<8x1xf32, #tpu.memory_space<vmem>>, vector<8x1xf32>
      tpu.vector_store %arg6[%c0_12, %c0_13], %20 {strides = array<i32>} : memref<8x1xf32, #tpu.memory_space<vmem>>, vector<8x1xf32>,
      %cst_14 = arith.constant 0.000000e+00 : f32
      %22 = vector.broadcast %cst_14 : f32 to vector<8x1xf32>
      %c0_15 = arith.constant 0 : index
      %c0_16 = arith.constant 0 : index
      %23 = vector.load %arg7[%c0_15, %c0_16] : memref<8x1xf32, #tpu.memory_space<vmem>>, vector<8x1xf32>
      tpu.vector_store %arg7[%c0_15, %c0_16], %22 {strides = array<i32>} : memref<8x1xf32, #tpu.memory_space<vmem>>, vector<8x1xf32>,
    } else {
    }
    %c0 = arith.constant 0 : index
    %c0_1 = arith.constant 0 : index
    %3 = vector.load %arg2[%c0, %c0_1] : memref<8x128xf32, #tpu.memory_space<vmem>>, vector<8x128xf32>
    %c0_2 = arith.constant 0 : index
    %c0_3 = arith.constant 0 : index
    %4 = vector.load %arg3[%c0_2, %c0_3] : memref<8x1xi32, #tpu.memory_space<vmem>>, vector<8x1xi32>
    %c128_i32 = arith.constant 128 : i32
    %5 = arith.muli %arg1, %c128_i32 : i32
    %6 = vector.broadcast %5 : i32 to vector<8x1xi32>
    %7 = arith.subi %4, %6 : vector<8x1xi32>
    %8 = tpu.iota {dimensions = array<i32: 1>} : vector<1x128xi32>
    %c1_i32 = arith.constant 1 : i32
    %9 = arith.cmpi slt, %arg1, %c1_i32 : i32
    %10 = arith.extui %9 : i1 to i32
    %c0_i32_4 = arith.constant 0 : i32
    %11 = arith.cmpi ne, %10, %c0_i32_4 : i32
    scf.if %11 {
      %cst = arith.constant dense<0xFF800000> : vector<8xf32>
      %18 = vector.multi_reduction <maximumf>, %3, %cst [1] : vector<8x128xf32> to vector<8xf32>
      %19 = vector.shape_cast %18 : vector<8xf32> to vector<8x1xf32>
      %c0_9 = arith.constant 0 : index
      %c0_10 = arith.constant 0 : index
      %20 = vector.load %arg5[%c0_9, %c0_10] : memref<8x1xf32, #tpu.memory_space<vmem>>, vector<8x1xf32>
      %21 = arith.maximumf %20, %19 : vector<8x1xf32>
      %c0_11 = arith.constant 0 : index
      %c0_12 = arith.constant 0 : index
      %22 = vector.load %arg5[%c0_11, %c0_12] : memref<8x1xf32, #tpu.memory_space<vmem>>, vector<8x1xf32>
      %23 = arith.subf %22, %21 : vector<8x1xf32>
      %24 = math.exp %23 : vector<8x1xf32>
      %25 = vector.broadcast %21 : vector<8x1xf32> to vector<8x128xf32>
      %26 = arith.subf %3, %25 : vector<8x128xf32>
      %27 = math.exp %26 : vector<8x128xf32>
      %c0_13 = arith.constant 0 : index
      %c0_14 = arith.constant 0 : index
      %28 = vector.load %arg6[%c0_13, %c0_14] : memref<8x1xf32, #tpu.memory_space<vmem>>, vector<8x1xf32>
      %29 = arith.mulf %24, %28 : vector<8x1xf32>
      %cst_15 = arith.constant dense<0.000000e+00> : vector<8xf32>
      %30 = vector.multi_reduction <add>, %27, %cst_15 [1] : vector<8x128xf32> to vector<8xf32>
      %31 = vector.shape_cast %30 : vector<8xf32> to vector<8x1xf32>
      %32 = arith.addf %29, %31 : vector<8x1xf32>
      %c0_16 = arith.constant 0 : index
      %c0_17 = arith.constant 0 : index
      %33 = vector.load %arg6[%c0_16, %c0_17] : memref<8x1xf32, #tpu.memory_space<vmem>>, vector<8x1xf32>
      tpu.vector_store %arg6[%c0_16, %c0_17], %32 {strides = array<i32>} : memref<8x1xf32, #tpu.memory_space<vmem>>, vector<8x1xf32>,
      %c0_18 = arith.constant 0 : index
      %c0_19 = arith.constant 0 : index
      %34 = vector.load %arg5[%c0_18, %c0_19] : memref<8x1xf32, #tpu.memory_space<vmem>>, vector<8x1xf32>
      tpu.vector_store %arg5[%c0_18, %c0_19], %21 {strides = array<i32>} : memref<8x1xf32, #tpu.memory_space<vmem>>, vector<8x1xf32>,
      %35 = vector.broadcast %8 : vector<1x128xi32> to vector<8x128xi32>
      %36 = vector.broadcast %7 : vector<8x1xi32> to vector<8x128xi32>
      %37 = arith.cmpi eq, %35, %36 : vector<8x128xi32>
      %cst_20 = arith.constant 0.000000e+00 : f32
      %38 = vector.broadcast %cst_20 : f32 to vector<8x128xf32>
      %39 = arith.select %37, %3, %38 : vector<8x128xi1>, vector<8x128xf32>
      %cst_21 = arith.constant dense<0.000000e+00> : vector<8xf32>
      %40 = vector.multi_reduction <add>, %39, %cst_21 [1] : vector<8x128xf32> to vector<8xf32>
      %41 = vector.shape_cast %40 : vector<8xf32> to vector<8x1xf32>
      %cst_22 = arith.constant dense<0.000000e+00> : vector<8xf32>
      %42 = vector.multi_reduction <add>, %3, %cst_22 [1] : vector<8x128xf32> to vector<8xf32>
      %43 = vector.shape_cast %42 : vector<8xf32> to vector<8x1xf32>
      %c0_23 = arith.constant 0 : index
      %c0_24 = arith.constant 0 : index
      %44 = vector.load %arg7[%c0_23, %c0_24] : memref<8x1xf32, #tpu.memory_space<vmem>>, vector<8x1xf32>
      %cst_25 = arith.constant 5.000000e-04 : f32
      %45 = vector.broadcast %cst_25 : f32 to vector<8x1xf32>
      %46 = arith.mulf %45, %43 : vector<8x1xf32>
      %cst_26 = arith.constant 0.899999976 : f32
      %47 = vector.broadcast %cst_26 : f32 to vector<8x1xf32>
      %48 = arith.mulf %47, %41 : vector<8x1xf32>
      %49 = arith.addf %46, %48 : vector<8x1xf32>
      %50 = arith.addf %44, %49 : vector<8x1xf32>
      %c0_27 = arith.constant 0 : index
      %c0_28 = arith.constant 0 : index
      %51 = vector.load %arg7[%c0_27, %c0_28] : memref<8x1xf32, #tpu.memory_space<vmem>>, vector<8x1xf32>
      tpu.vector_store %arg7[%c0_27, %c0_28], %50 {strides = array<i32>} : memref<8x1xf32, #tpu.memory_space<vmem>>, vector<8x1xf32>,
    } else {
    }
    %c1_i32_5 = arith.constant 1 : i32
    %12 = arith.cmpi eq, %arg1, %c1_i32_5 : i32
    %13 = arith.extui %12 : i1 to i32
    %c0_i32_6 = arith.constant 0 : i32
    %14 = arith.cmpi ne, %13, %c0_i32_6 : i32
    scf.if %14 {
      %c128_i32_9 = arith.constant 128 : i32
      %18 = arith.muli %arg1, %c128_i32_9 : i32
      %c200_i32 = arith.constant 200 : i32
      %19 = arith.subi %c200_i32, %18 : i32
      %20 = vector.broadcast %19 : i32 to vector<1x128xi32>
      %21 = arith.cmpi slt, %8, %20 : vector<1x128xi32>
      %cst = arith.constant -1.000000e+30 : f32
      %22 = vector.shape_cast %21 : vector<1x128xi1> to vector<1x128xi1>
      %23 = vector.broadcast %22 : vector<1x128xi1> to vector<8x128xi1>
      %24 = vector.broadcast %cst : f32 to vector<8x128xf32>
      %25 = arith.select %23, %3, %24 : vector<8x128xi1>, vector<8x128xf32>
      %cst_10 = arith.constant 0.000000e+00 : f32
      %26 = vector.shape_cast %21 : vector<1x128xi1> to vector<1x128xi1>
      %27 = vector.broadcast %26 : vector<1x128xi1> to vector<8x128xi1>
      %28 = vector.broadcast %cst_10 : f32 to vector<8x128xf32>
      %29 = arith.select %27, %3, %28 : vector<8x128xi1>, vector<8x128xf32>
      %cst_11 = arith.constant dense<0xFF800000> : vector<8xf32>
      %30 = vector.multi_reduction <maximumf>, %25, %cst_11 [1] : vector<8x128xf32> to vector<8xf32>
      %31 = vector.shape_cast %30 : vector<8xf32> to vector<8x1xf32>
      %c0_12 = arith.constant 0 : index
      %c0_13 = arith.constant 0 : index
      %32 = vector.load %arg5[%c0_12, %c0_13] : memref<8x1xf32, #tpu.memory_space<vmem>>, vector<8x1xf32>
      %33 = arith.maximumf %32, %31 : vector<8x1xf32>
      %c0_14 = arith.constant 0 : index
      %c0_15 = arith.constant 0 : index
      %34 = vector.load %arg5[%c0_14, %c0_15] : memref<8x1xf32, #tpu.memory_space<vmem>>, vector<8x1xf32>
      %35 = arith.subf %34, %33 : vector<8x1xf32>
      %36 = math.exp %35 : vector<8x1xf32>
      %37 = vector.broadcast %33 : vector<8x1xf32> to vector<8x128xf32>
      %38 = arith.subf %25, %37 : vector<8x128xf32>
      %39 = math.exp %38 : vector<8x128xf32>
      %c0_16 = arith.constant 0 : index
      %c0_17 = arith.constant 0 : index
      %40 = vector.load %arg6[%c0_16, %c0_17] : memref<8x1xf32, #tpu.memory_space<vmem>>, vector<8x1xf32>
      %41 = arith.mulf %36, %40 : vector<8x1xf32>
      %cst_18 = arith.constant dense<0.000000e+00> : vector<8xf32>
      %42 = vector.multi_reduction <add>, %39, %cst_18 [1] : vector<8x128xf32> to vector<8xf32>
      %43 = vector.shape_cast %42 : vector<8xf32> to vector<8x1xf32>
      %44 = arith.addf %41, %43 : vector<8x1xf32>
      %c0_19 = arith.constant 0 : index
      %c0_20 = arith.constant 0 : index
      %45 = vector.load %arg6[%c0_19, %c0_20] : memref<8x1xf32, #tpu.memory_space<vmem>>, vector<8x1xf32>
      tpu.vector_store %arg6[%c0_19, %c0_20], %44 {strides = array<i32>} : memref<8x1xf32, #tpu.memory_space<vmem>>, vector<8x1xf32>,
      %c0_21 = arith.constant 0 : index
      %c0_22 = arith.constant 0 : index
      %46 = vector.load %arg5[%c0_21, %c0_22] : memref<8x1xf32, #tpu.memory_space<vmem>>, vector<8x1xf32>
      tpu.vector_store %arg5[%c0_21, %c0_22], %33 {strides = array<i32>} : memref<8x1xf32, #tpu.memory_space<vmem>>, vector<8x1xf32>,
      %47 = vector.broadcast %8 : vector<1x128xi32> to vector<8x128xi32>
      %48 = vector.broadcast %7 : vector<8x1xi32> to vector<8x128xi32>
      %49 = arith.cmpi eq, %47, %48 : vector<8x128xi32>
      %cst_23 = arith.constant 0.000000e+00 : f32
      %50 = vector.broadcast %cst_23 : f32 to vector<8x128xf32>
      %51 = arith.select %49, %29, %50 : vector<8x128xi1>, vector<8x128xf32>
      %cst_24 = arith.constant dense<0.000000e+00> : vector<8xf32>
      %52 = vector.multi_reduction <add>, %51, %cst_24 [1] : vector<8x128xf32> to vector<8xf32>
      %53 = vector.shape_cast %52 : vector<8xf32> to vector<8x1xf32>
      %cst_25 = arith.constant dense<0.000000e+00> : vector<8xf32>
      %54 = vector.multi_reduction <add>, %29, %cst_25 [1] : vector<8x128xf32> to vector<8xf32>
      %55 = vector.shape_cast %54 : vector<8xf32> to vector<8x1xf32>
      %c0_26 = arith.constant 0 : index
      %c0_27 = arith.constant 0 : index
      %56 = vector.load %arg7[%c0_26, %c0_27] : memref<8x1xf32, #tpu.memory_space<vmem>>, vector<8x1xf32>
      %cst_28 = arith.constant 5.000000e-04 : f32
      %57 = vector.broadcast %cst_28 : f32 to vector<8x1xf32>
      %58 = arith.mulf %57, %55 : vector<8x1xf32>
      %cst_29 = arith.constant 0.899999976 : f32
      %59 = vector.broadcast %cst_29 : f32 to vector<8x1xf32>
      %60 = arith.mulf %59, %53 : vector<8x1xf32>
      %61 = arith.addf %58, %60 : vector<8x1xf32>
      %62 = arith.addf %56, %61 : vector<8x1xf32>
      %c0_30 = arith.constant 0 : index
      %c0_31 = arith.constant 0 : index
      %63 = vector.load %arg7[%c0_30, %c0_31] : memref<8x1xf32, #tpu.memory_space<vmem>>, vector<8x1xf32>
      tpu.vector_store %arg7[%c0_30, %c0_31], %62 {strides = array<i32>} : memref<8x1xf32, #tpu.memory_space<vmem>>, vector<8x1xf32>,
    } else {
    }
    %c1_i32_7 = arith.constant 1 : i32
    %15 = arith.cmpi eq, %arg1, %c1_i32_7 : i32
    %16 = arith.extui %15 : i1 to i32
    %c0_i32_8 = arith.constant 0 : i32
    %17 = arith.cmpi ne, %16, %c0_i32_8 : i32
    scf.if %17 {
      %c0_9 = arith.constant 0 : index
      %c0_10 = arith.constant 0 : index
      %18 = vector.load %arg5[%c0_9, %c0_10] : memref<8x1xf32, #tpu.memory_space<vmem>>, vector<8x1xf32>
      %c0_11 = arith.constant 0 : index
      %c0_12 = arith.constant 0 : index
      %19 = vector.load %arg6[%c0_11, %c0_12] : memref<8x1xf32, #tpu.memory_space<vmem>>, vector<8x1xf32>
      %20 = math.log %19 : vector<8x1xf32>
      %21 = arith.addf %18, %20 : vector<8x1xf32>
      %c0_13 = arith.constant 0 : index
      %c0_14 = arith.constant 0 : index
      %22 = vector.load %arg7[%c0_13, %c0_14] : memref<8x1xf32, #tpu.memory_space<vmem>>, vector<8x1xf32>
      %23 = arith.subf %21, %22 : vector<8x1xf32>
      %24 = tpu.iota {dimensions = array<i32: 0>} : vector<8x1xi32>
      %c8_i32 = arith.constant 8 : i32
      %25 = arith.muli %arg0, %c8_i32 : i32
      %26 = vector.broadcast %25 : i32 to vector<8x1xi32>
      %27 = arith.addi %24, %26 : vector<8x1xi32>
      %c20_i32 = arith.constant 20 : i32
      %28 = vector.broadcast %c20_i32 : i32 to vector<8x1xi32>
      %29 = arith.cmpi slt, %27, %28 : vector<8x1xi32>
      %cst = arith.constant 0.000000e+00 : f32
      %30 = vector.broadcast %cst : f32 to vector<8x1xf32>
      %31 = arith.select %29, %23, %30 : vector<8x1xi1>, vector<8x1xf32>
      %32 = vector.shape_cast %31 : vector<8x1xf32> to vector<8xf32>
      %c0_15 = arith.constant 0 : index
      %c0_16 = arith.constant 0 : index
      %c0_17 = arith.constant 0 : index
      %33 = vector.load %arg4[%c0_15, %c0_16, %c0_17] : memref<1x1x8xf32, #tpu.memory_space<vmem>>, vector<1x1x8xf32>
      %34 = vector.shape_cast %33 : vector<1x1x8xf32> to vector<8xf32>
      %35 = vector.shape_cast %32 : vector<8xf32> to vector<1x1x8xf32>
      tpu.vector_store %arg4[%c0_15, %c0_16, %c0_17], %35 {strides = array<i32>} : memref<1x1x8xf32, #tpu.memory_space<vmem>>, vector<1x1x8xf32>,
    } else {
    }
    return
  }
  func.func @transform_0(%arg0: i32, %arg1: i32) -> (i32, i32) {
    %c0_i32 = arith.constant 0 : i32
    return %arg0, %arg1 : i32, i32
  }
  func.func @transform_1(%arg0: i32, %arg1: i32) -> (i32, i32) {
    %c0_i32 = arith.constant 0 : i32
    %c0_i32_0 = arith.constant 0 : i32
    return %arg0, %c0_i32 : i32, i32
  }
  func.func @transform_2(%arg0: i32, %arg1: i32) -> (i32, i32, i32) {
    %c0_i32 = arith.constant 0 : i32
    %c0_i32_0 = arith.constant 0 : i32
    %c0_i32_1 = arith.constant 0 : i32
    return %arg0, %c0_i32, %c0_i32_0 : i32, i32, i32
  }
}

</mosaic_0001>

<bundles_post_ra>
// kernel: tpu_custom_call.1
= control target key start
LH: loop header
LB: loop body
LE: loop exit
PB: predicated region body
PF: predicated region fallthrough
CT: control target
= control target key end

     0   :  { %7 = vsyncpa [#allocation6], 0  ;;  %s1003_s0 = inlined_call_operand.hbm [shape: f32[20,200], index: 0, kind: input, shape index: {}]   ;;  %s1004_s1 = inlined_call_operand.vmem [shape: s32[20,1], index: 1, kind: input, shape index: {}]   ;;  %s1005_s2 = inlined_call_operand.hbm [shape: f32[3,1,8], index: 2, kind: output, shape index: {}]  }
   0x1   :  { %9 = vsyncpa [#allocation6 + $0x1], 0 }
   0x2   :  { %10 = vsyncpa [#allocation7], 0 }
   0x3   :  { %12 = vsyncpa [#allocation7 + $0x1], 0  ;;  %s739_s9 = smov 0   ;;  %s741_s10 = smov 0  }
   0x4   :  { %s743_s11 = smov 0   ;;  %s745_s12 = smov 0  }
   0x5   :  { %s747_s13 = smov 0   ;;  %s749_s14 = smov 0  }
   0x6   :  { %s751_s15 = smov 0   ;;  %s753_s16 = smov 0  }
   0x7   :  { %s755_s17 = smov 0   ;;  %s757_s18 = smov 0  }
   0x8   :  { %s759_s19 = smov 0  }
   0x9 LB: > { %s426_s20 = sadd.s32 4294967295, %s716_s19   ;;  %s427_s21 = sadd.s32 4294967294, %s716_s19   ;;  %s716_s19 = sphi %s759_s19, %s18_s19   ;;  %s712_s18 = sphi %s757_s18, %s1030_s18   ;;  %s708_s17 = sphi %s755_s17, %s1029_s17   ;;  %s704_s16 = sphi %s753_s16, %s1028_s16   ;;  %s700_s15 = sphi %s751_s15, %s1027_s15   ;;  %s696_s14 = sphi %s749_s14, %s1026_s14   ;;  %s692_s13 = sphi %s747_s13, %s1025_s13   ;;  %s688_s12 = sphi %s745_s12, %s1024_s12   ;;  %s684_s11 = sphi %s743_s11, %s1023_s11   ;;  %s680_s10 = sphi %s741_s10, %s1022_s10   ;;  %s676_s9 = sphi %s739_s9, %s1021_s9  }
   0xa   : > { %s27_s22 = sadd.s32 1, %s708_s17  ;;  %s30_s23 = sadd.s32 1, %s712_s18 }
   0xb   : > { %p28_p0 = scmp.ge.s32.totalorder %s27_s22, 2  ;;  %s39_s24 = sadd.s32 1, %s696_s14 }
   0xc   : > { %p46_p1 = scmp.ne.s32.totalorder %s696_s14, %s692_s13  ;;  %p47_p2 = scmp.eq.s32.totalorder %s716_s19, 0 }
   0xd   : > { %s1032_s22 = smov (%p28_p0, %s27_s22), 0  ;;  %s1034_s23 = smov (!%p28_p0, %s30_s23), %s712_s18 }
   0xe   : > { %s35_s25 = ssub.s32 %s708_s17, %s1032_s22  ;;  %p805_p3 = por %p47_p2, %p46_p1 }
   0xf   : > { %p32_p4 = scmp.ge.s32.totalorder %s1034_s23, 3  ;;  %p52_p5 = scmp.ne.s32.totalorder %s692_s13, %s688_s12 }
  0x10   : > { %p53_p6 = scmp.eq.s32.totalorder %s426_s20, 0  ;;  %s91_s27 = sadd.s32 1, %s684_s11 }
  0x11   : > { %s1036_s23 = smov (%p32_p4, %s1034_s23), 0  ;;  %p101_p8 = scmp.ne.s32.totalorder %s684_s11, %s680_s10 }
  0x12   : > { %1009 = sst [smem:[#allocation11_spill]] %s1036_s23  ;;  %p813_p7 = por %p53_p6, %p52_p5 }
  0x13   : > { %s34_s29 = ssub.s32 %s712_s18, %s1036_s23  ;;  %p102_p9 = scmp.eq.s32.totalorder %s426_s20, 5 }
  0x14   : > { %s36_s30 = sor.u32 %s35_s25, %s34_s29  ;;  %p89_p10 = scmp.eq.s32.totalorder %s34_s29, 0 }
  0x15   : > { %p37_p11 = scmp.eq.s32.totalorder %s36_s30, 0  ;;  %p821_p12 = por %p102_p9, %p101_p8 }
  0x16   : > { %s826_s4 = scalar_select %p89_p10, %s684_s11, %s91_s27  }
  0x17   : > { %s1011_s3 = scalar_select %p821_p12, 1, 0 }
  0x18   : > { %s829_s5 = scalar_select %p37_p11, %s696_s14, %s39_s24  }
  0x19   : > { %p107_p13 = scmp.ne.s32.totalorder %s680_s10, %s676_s9  ;;  %p108_p0 = scmp.eq.s32.totalorder %s427_s21, 5 }
  0x1a   : > { %p456_p1 = scmp.lt.s32.totalorder %s716_s19, 6  ;;  %s128_s7 = sand.u32 1, %s696_s14  }
  0x1b   : > { %p834_p2 = por %p108_p0, %p107_p13  ;;  %s430_s8 = sshll.u32 %s128_s7, 3 }
  0x1c   : > { %s431_s12 = sshll.u32 %s712_s18, 1  ;;  %s132_s25 = scalar_lea.vmem [#allocation5], %s430_s8 }
  0x1d   : > { %s1012_s6 = scalar_select %p834_p2, 1, 0 }
  0x1e   : > { %s137_s20 = sadd.s32 %s708_s17, %s431_s12  ;;  %s141_s29 = sshll.u32 %s132_s25, 4  ;;  %s841_s29 = int_to_ptr.vmem [resolvable:$true] %s141_s29 }
  0x1f   : > { %s432_s30 = sshll.u32 %s137_s20, 7  ;;  %p850_p4 = pnand %p456_p1, %p805_p3 }
  0x20   : > { %s846_s23 = scalar_lea.hbm %s1003_s0, %s432_s30  ;;  %s129_s8 = scalar_lea.sflag [#allocation6], %s128_s7 }
  0x21   : > { %s564_s12 = scalar_lea.hbm %s846_s23, 128  ;;  %p566_p9 = pneg %p850_p4 }
  0x22   : > { %p565_p8 = scmp.ne.s32.totalorder %s846_s23, %s564_s12  ;;  %s569_s25 = scalar_lea.hbm %s1003_s0, 768 }
  0x23   : > { %p570_p3 = scmp.lt.u32.totalorder %s846_s23, %s1003_s0  ;;  %p571_p13 = scmp.lt.u32.totalorder %s569_s25, %s564_s12 }
  0x24   : > { %p567_p10 = pnand %p566_p9, %p565_p8  ;;  %p573_p1 = scmp.lt.u32.totalorder %s564_s12, %s846_s23 }
  0x25   : > { %p572_p0 = por %p571_p13, %p570_p3 }
  0x26   : > { %p568_p11 = pneg %p567_p10 }
  0x27   : > { %p574_p5 = por %p573_p1, %p572_p0 }
  0x29   : > { %p575_p6 = pnand %p574_p5, %p568_p11 }
  0x2b   : > { %578 = shalt.err (!%p575_p6)
}
  0x2c   : > { %s579_s7 = scalar_lea.vmem %s841_s29, 128  ;;  %s718_s24 = smov [#allocation5]  }
  0x2d   : > { %p580_p8 = scmp.ne.s32.totalorder %s841_s29, %s579_s7  ;;  %s584_s26 = sshll.u32 %s718_s24, 4  ;;  %s585_s26 = int_to_ptr.vmem [resolvable:$false] %s584_s26 }
  0x2e   : > { %s586_s20 = scalar_lea.vmem %s585_s26, 256  ;;  %p587_p12 = scmp.lt.s32.totalorder %s841_s29, %s585_s26 }
  0x2f   : > { %p582_p10 = pnand %p580_p8, %p566_p9  ;;  %p588_p3 = scmp.lt.s32.totalorder %s586_s20, %s579_s7 }
  0x31   : > { %p583_p2 = pneg %p582_p10  ;;  %p589_p13 = por %p588_p3, %p587_p12 }
  0x33   : > { %p590_p0 = pnand %p589_p13, %p583_p2 }
  0x35   : > { %593 = shalt.err (!%p590_p0)
}
  0x36   : > { %451 = dma.hbm_to_vmem [thread:$0]  (!%p850_p4), %s846_s23, 128, %s841_s29, %s129_s8  }
  0x37   : > { %p1014_p5 = scmp.lt.s32.totalorder %s716_s19, 7  ;;  %p1015_p6 = scmp.ge.s32.totalorder %s716_s19, 1 }
  0x39   : > { %p154_p9 = pnand %p1015_p6, %p1014_p5 }
  0x3a   : > { %s159_s12 = sand.u32 (!%p154_p9), 1, %s692_s13  }
  0x3b   : > { %157 = sbr.rel (%p154_p9) target bundleno = 1128 (0x468), region = 28  ;;  %s434_s25 = sshll.u32 (!%p154_p9), %s159_s12, 3 }
  0x3c   : > { %s160_s30 = scalar_lea.sflag (!%p154_p9), [#allocation6], %s159_s12  ;;  %s163_s27 = scalar_lea.vmem (!%p154_p9), [#allocation5], %s434_s25 }
  0x42   : > { %667 = dma.done.wait (%p813_p7), %s160_s30, 128  }
  0x43   : > { %669 = vsyncadd (%p813_p7), %s160_s30, 4294967168  ;;  %s185_s23 = sand.u32 1, %s680_s10   ;;  %p187_p12 = scmp.lt.s32.totalorder %s704_s16, 2 }
  0x44   : > { %s898_s26 = scalar_lea.vmem [#allocation8], %s185_s23  ;;  %p436_p2 = scmp.ne.s32.totalorder %s700_s15, 0 }
  0x45   : > { %s188_s29 = scalar_select %p187_p12, %s704_s16, 2 }
  0x46   : > { %194 = sbr.rel (%p436_p2) target bundleno = 77 (0x4d), region = 36  ;;  %vm195_vm0 = vcmask (!%p436_p2), 7168   ;;  %v719_v0 = vmov (!%p436_p2), -1e+30   ;;  %v720_v1 = vmov (!%p436_p2), 0.0  }
  0x47   : > { %s435_s21 = sshll.u32 %s188_s29, 3  ;;  %196 = vst.msk [vmem:[#allocation2] sm:$0xff] (!%p436_p2), %vm195_vm0, %v719_v0  ;;  %197 = vst.msk [vmem:[#allocation3] sm:$0xff] (!%p436_p2), %vm195_vm0, %v720_v1 }
  0x48   : > { %s190_s24 = scalar_lea.vmem %s1004_s1, %s435_s21  ;;  %198 = vst.msk [vmem:[#allocation4] sm:$0xff] (!%p436_p2), %vm195_vm0, %v720_v1 }
  0x4d PF: > { %v901_v2 = vld [vmem:[%s163_s27] sm:$0xff]  ;;  %s437_s28 = sshll.u32 %s700_s15, 7  ;;  %v204_v4 = vlaneseq  ;;  %p438_p7 = scmp.ge.s32.totalorder %s700_s15, 1 }
  0x4e   : > { %v200_v3 = vld [vmem:[%s190_s24] sm:$0xff]  ;;  %v202_v5 = vstv %s437_s28  ;;  %210 = vmax.xlane.f32.xlu0 (!%p438_p7), %v901_v2  ;;  %v721_v8 = vmov (!%p438_p7), 0   ;;  %vm230_vm1 = vcmask (!%p438_p7), 7168   ;;  %v225_v28 = vld [vmem:[#allocation3] sm:$0xff] (!%p438_p7) }
  0x4f   : > { %v203_v6 = vsub.s32 %v200_v3, %v202_v5  ;;  %v907_v7 = vand.u32 127, %v204_v4  ;;  %209 = sbr.rel (%p438_p7) target bundleno = 510 (0x1fe), region = 40  ;;  %550 = vset.pattern.permute.xlu0 (!%p438_p7), %v721_v8  ;;  %551 = vset.pattern.permute.xlu1 (!%p438_p7), %v721_v8  ;;  %v212_v9 = vld [vmem:[#allocation2] sm:$0xff] (!%p438_p7)  ;;  %v242_v23 = vld [vmem:[#allocation4] sm:$0xff] (!%p438_p7) }
  0x51   : > { %234 = vperm.xlu1 (!%p438_p7), %551, %v203_v6  }
  0xd0   : > { %v235_v13 = vpop.permute.xlu1 %234 }
  0xd1   : > { %vm236_vm2 = vcmp.eq.s32.totalorder %v907_v7, %v235_v13 }
  0xd2   : > { %v237_v14 = vsel %vm236_vm2, %v901_v2, 0.0 }
  0xd3   : > { %238 = vadd.xlane.f32.xlu1 %v237_v14 }
  0xd7   : > { %240 = vadd.xlane.f32.xlu1 %v901_v2 }
  0xdb   : > { %v211_v10 = vpop.xlane.xlu0 %210 }
  0xdc   : > { %v213_v11 = vmax.f32 %v212_v9, %v211_v10 }
  0xde   : > { %v214_v12 = vsub.f32 %v212_v9, %v213_v11  ;;  %232 = vst.msk [vmem:[#allocation2] sm:$0xff] %vm230_vm1, %v213_v11  ;;  %219 = vperm.xlu0 %550, %v213_v11  }
  0xe0   : > { %v215_v26 = vmul.f32 1.442695, %v214_v12 }
 0x15d   : > { %v220_v15 = vpop.permute.xlu0 %219 }
 0x15e   : > { %v222_v16 = vsub.f32 %v901_v2, %v220_v15 }
 0x160   : > { %v223_v17 = vmul.f32 1.442695, %v222_v16  ;;  %v239_v19 = vpop.xlane.xlu1 %238 }
 0x161   : > { %v244_v20 = vmul.f32 0.9, %v239_v19 }
 0x162   : > { %552 = vpow2.f32 %v223_v17 }
 0x163   : > { %554 = vpow2.f32 %v215_v26 }
 0x164   : > { %v241_v21 = vpop.xlane.xlu1 %240 }
 0x165   : > { %v243_v22 = vmul.f32 0.0005, %v241_v21 }
 0x167   : > { %v245_v24 = vadd.f32 %v244_v20, %v243_v22 }
 0x169   : > { %v246_v25 = vadd.f32 %v245_v24, %v242_v23 }
 0x16b   : > { %247 = vst.msk [vmem:[#allocation4] sm:$0xff] %vm230_vm1, %v246_v25 }
 0x16c   : > { %v553_v18 = vpop.eup %552 }
 0x16d   : > { %227 = vadd.xlane.f32.xlu1 %v553_v18  ;;  %v555_v27 = vpop.eup %554 }
 0x16e   : > { %v226_v29 = vmul.f32 %v555_v27, %v225_v28 }
 0x1fa   : > { %v228_v30 = vpop.xlane.xlu1 %227 }
 0x1fb   : > { %v229_v31 = vadd.f32 %v228_v30, %v226_v29 }
 0x1fd   : > { %231 = vst.msk [vmem:[#allocation3] sm:$0xff] %vm230_vm1, %v229_v31 }
 0x1fe PF: > { %p439_p4 = scmp.ne.s32.totalorder %s700_s15, 1 }
 0x1ff   : > { %s252_s20 = ssub.s32 (!%p439_p4), 200, %s437_s28  ;;  %v722_v35 = vmov (!%p439_p4), 0   ;;  %v261_v36 = vld [vmem:[#allocation2] sm:$0xff] (!%p439_p4)  ;;  %vm279_vm4 = vcmask (!%p439_p4), 7168   ;;  %v291_v57 = vld [vmem:[#allocation4] sm:$0xff] (!%p439_p4)  ;;  %s440_s15 = sshll.u32 (!%p439_p4), %s704_s16, 3 }
 0x200   : > { %251 = sbr.rel (%p439_p4) target bundleno = 1103 (0x44f), region = 44  ;;  %v253_v32 = vstv (!%p439_p4), %s252_s20  ;;  %556 = vset.pattern.permute.xlu0 (!%p439_p4), %v722_v35  ;;  %557 = vset.pattern.permute.xlu1 (!%p439_p4), %v722_v35  ;;  %v305_v61 = vshrl.u32 (!%p439_p4), %v204_v4, 7  ;;  %v307_v62 = vstv (!%p439_p4), %s440_s15  ;;  %vm320_vm7 = vcmask (!%p439_p4), 57344  }
 0x201   : > { %vm922_vm3 = vcmp.lt.s32.totalorder (!%p439_p4), %v907_v7, %v253_v32  ;;  %283 = vperm.xlu1 (!%p439_p4), %557, %v203_v6  }
 0x202   : > { %v257_v34 = vsel (!%p439_p4), %vm922_vm3, %v901_v2, -1e+30  ;;  %v258_v44 = vsel (!%p439_p4), %vm922_vm3, %v901_v2, 0.0  ;;  %v308_v0 = vadd.s32 (!%p439_p4), %v307_v62, %v305_v61  ;;  %v317_v9 = vsub.s32 (!%p439_p4), %v907_v7, %v305_v61 }
 0x203   : > { %259 = vmax.xlane.f32.xlu0 (!%p439_p4), %v257_v34 }
 0x204   : > { %v274_v49 = vld [vmem:[#allocation3] sm:$0xff] (!%p439_p4)  ;;  %vm309_vm6 = vcmp.lt.s32.totalorder (!%p439_p4), %v308_v0, 20 }
 0x280   : > { %v284_v43 = vpop.permute.xlu1 %283 }
 0x281   : > { %vm285_vm5 = vcmp.eq.s32.totalorder %v907_v7, %v284_v43 }
 0x282   : > { %v286_v46 = vsel %vm285_vm5, %v258_v44, 0.0 }
 0x290   : > { %v260_v37 = vpop.xlane.xlu0 %259 }
 0x291   : > { %v262_v38 = vmax.f32 %v261_v36, %v260_v37 }
 0x293   : > { %v263_v39 = vsub.f32 %v261_v36, %v262_v38  ;;  %281 = vst.msk [vmem:[#allocation2] sm:$0xff] %vm279_vm4, %v262_v38  ;;  %268 = vperm.xlu0 %556, %v262_v38  }
 0x295   : > { %v264_v47 = vmul.f32 1.442695, %v263_v39 }
 0x29a   : > { %v297_v2 = vld [vmem:[#allocation2] sm:$0xff] }
 0x312   : > { %v269_v40 = vpop.permute.xlu0 %268 }
 0x313   : > { %v271_v41 = vsub.f32 %v257_v34, %v269_v40 }
 0x315   : > { %v272_v42 = vmul.f32 1.442695, %v271_v41 }
 0x317   : > { %558 = vpow2.f32 %v272_v42 }
 0x318   : > { %560 = vpow2.f32 %v264_v47 }
 0x321   : > { %v559_v45 = vpop.eup %558 }
 0x322   : > { %276 = vadd.xlane.f32.xlu1 %v559_v45  ;;  %v561_v48 = vpop.eup %560 }
 0x323   : > { %v275_v50 = vmul.f32 %v561_v48, %v274_v49 }
 0x326   : > { %287 = vadd.xlane.f32.xlu1 %v286_v46 }
 0x32a   : > { %289 = vadd.xlane.f32.xlu1 %v258_v44 }
 0x3af   : > { %v277_v51 = vpop.xlane.xlu1 %276 }
 0x3b0   : > { %v278_v52 = vadd.f32 %v277_v51, %v275_v50 }
 0x3b2   : > { %280 = vst.msk [vmem:[#allocation3] sm:$0xff] %vm279_vm4, %v278_v52 }
 0x3b3   : > { %v288_v53 = vpop.xlane.xlu1 %287 }
 0x3b4   : > { %v293_v54 = vmul.f32 0.9, %v288_v53 }
 0x3b7   : > { %v290_v55 = vpop.xlane.xlu1 %289 }
 0x3b8   : > { %v292_v56 = vmul.f32 0.0005, %v290_v55 }
 0x3b9   : > { %v298_v58 = vld [vmem:[#allocation3] sm:$0xff] }
 0x3ba   : > { %v294_v59 = vadd.f32 %v293_v54, %v292_v56  ;;  %562 = vlog2.f32 %v298_v58 }
 0x3bc   : > { %v295_v60 = vadd.f32 %v294_v59, %v291_v57 }
 0x3be   : > { %296 = vst.msk [vmem:[#allocation4] sm:$0xff] %vm279_vm4, %v295_v60 }
 0x3c4   : > { %v563_v63 = vpop.eup %562 }
 0x3c5   : > { %v300_v1 = vmul.f32 0.6931472, %v563_v63  ;;  %v302_v5 = vld [vmem:[#allocation4] sm:$0xff] }
 0x3c7   : > { %v301_v3 = vadd.f32 %v300_v1, %v297_v2 }
 0x3c9   : > { %v303_v6 = vsub.f32 %v301_v3, %v302_v5 }
 0x3cb   : > { %v310_v8 = vsel %vm309_vm6, %v303_v6, 0.0 }
 0x3cc   : > { %313 = vperm.xlu0 %556, %v310_v8  }
 0x44b   : > { %v314_v10 = vpop.permute.xlu0 %313 }
 0x44c   : > { %v318_v11 = vrot.slane %v314_v10, %v317_v9 }
 0x44e   : > { %321 = vst.msk [vmem:[%s898_s26] sm:$0x1] %vm320_vm7, %v318_v11 }
 0x44f PF: > { %s441_s12 = sshll.u32 %s704_s16, 4  ;;  %s335_s29 = sshll.u32 %s898_s26, 4  ;;  %s336_s29 = int_to_ptr.vmem [resolvable:$true] %s335_s29 }
 0x450   : > { %s944_s27 = scalar_lea.hbm %s1005_s2, %s441_s12  ;;  %s323_s21 = scalar_lea.sflag [#allocation7], %s185_s23 }
 0x451   : > { %s594_s8 = scalar_lea.vmem %s336_s29, 16  ;;  %p1018_p1 = scmp.ne.s32.totalorder %s1011_s3, 0 }
 0x452   : > { %p595_p11 = scmp.ne.s32.totalorder %s336_s29, %s594_s8  ;;  %s723_s7 = smov [#allocation8]  }
 0x453   : > { %s598_s24 = sshll.u32 %s723_s7, 4  ;;  %s599_s24 = int_to_ptr.vmem [resolvable:$false] %s598_s24 }
 0x454   : > { %p596_p8 = pnand %p595_p11, %p1018_p1  ;;  %s600_s28 = scalar_lea.vmem %s599_s24, 32 }
 0x455   : > { %p601_p3 = scmp.lt.s32.totalorder %s336_s29, %s599_s24  ;;  %p602_p13 = scmp.lt.s32.totalorder %s600_s28, %s594_s8 }
 0x456   : > { %p597_p10 = pneg %p596_p8 }
 0x457   : > { %p603_p0 = por %p602_p13, %p601_p3 }
 0x459   : > { %p604_p5 = pnand %p603_p0, %p597_p10 }
 0x45b   : > { %607 = shalt.err (!%p604_p5)
}
 0x45c   : > { %s608_s16 = scalar_lea.hbm %s944_s27, 16  ;;  %s612_s20 = scalar_lea.hbm %s1005_s2, 48 }
 0x45d   : > { %p609_p6 = scmp.ne.s32.totalorder %s944_s27, %s608_s16  ;;  %p613_p2 = scmp.lt.u32.totalorder %s944_s27, %s1005_s2 }
 0x45e   : > { %p614_p7 = scmp.lt.u32.totalorder %s612_s20, %s608_s16  ;;  %p616_p11 = scmp.lt.u32.totalorder %s608_s16, %s944_s27 }
 0x45f   : > { %p610_p9 = pnand %p609_p6, %p1018_p1 }
 0x460   : > { %p615_p4 = por %p614_p7, %p613_p2 }
 0x461   : > { %p611_p12 = pneg %p610_p9 }
 0x462   : > { %p617_p8 = por %p616_p11, %p615_p4 }
 0x464   : > { %p618_p10 = pnand %p617_p8, %p611_p12 }
 0x466   : > { %621 = shalt.err (!%p618_p10)
}
 0x467   : > { %446 = dma.vmem_to_hbm [thread:$0]  (%p1018_p1), %s336_s29, 16, %s944_s27, %s323_s21  }
 0x468 PF: > { %p457_p3 = scmp.ge.s32.totalorder %s716_s19, 2  ;;  %s347_s25 = sand.u32 1, %s676_s9  }
 0x469   : > { %p1019_p13 = scmp.ne.s32.totalorder %s1012_s6, 0  ;;  %s348_s30 = scalar_lea.sflag [#allocation7], %s347_s25 }
 0x46b   : > { %p453_p0 = pnand %p457_p3, %p1019_p13 }
 0x46d   : > { %671 = dma.done.wait (!%p453_p0), %s348_s30, 16  }
 0x46e   : > { %673 = vsyncadd (!%p453_p0), %s348_s30, 4294967280  ;;  %s18_s19 = sadd.s32 1, %s716_s19   ;;  %s1020_s3 = sld [smem:[#allocation11_spill]] }
 0x46f   : > { %p15_p5 = scmp.ge.s32.totalorder %s18_s19, 8   ;;  %s1021_s9 = smov %s680_s10 }
 0x470   : > { %s1022_s10 = smov %s684_s11  ;;  %s1023_s11 = smov %s826_s4 }
 0x471   : > { %s1024_s12 = smov %s692_s13  ;;  %s1025_s13 = smov %s696_s14 }
 0x472   : > { %s1026_s14 = smov %s829_s5  ;;  %s1027_s15 = smov %s708_s17 }
 0x473   : > { %s1028_s16 = smov %s712_s18  ;;  %s1029_s17 = smov %s1032_s22 }
 0x474   : > { %s1030_s18 = smov %s1020_s3  ;;  %17 = sbr.rel (!%p15_p5) target bundleno = 9 (0x9), region = 88 }
 0x47b   :  { %352 = vsyncpa [#allocation6], 1 }
 0x47c   :  { %354 = vsyncpa [#allocation6 + $0x1], 1 }
 0x47d   :  { %355 = vsyncpa [#allocation7], 1 }
 0x47e   :  { %357 = vsyncpa [#allocation7 + $0x1], 1 }

</bundles_post_ra>
